<compile_context>
chip_gen: v7x
topology: tpu7x:2x2x1
jax: 0.10.0
libtpu: 0.0.40
codegen_flags: <defaults>
</compile_context>

<pallas_src>
import jax
import jax.numpy as jnp
from jax.experimental import pallas as pl
from jax.experimental.pallas import tpu as pltpu


def _round_up(x, m):
    return ((x + m - 1) // m) * m


def _fused_gpt_kernel(idx_ref, tok_ref, pos_ref, wqkv_ref, wlm_ref, blm_ref,
                      out_ref):
    # idx_ref : (B*T, 1) int32 VMEM token ids (pre-clipped)
    # tok_ref : (Vr, C)  f32 token table, rows padded to a 128 multiple
    # pos_ref : (T, C)   f32 positional table slice
    # wqkv_ref: (C, 3C)  f32 packed [wq*C^-0.5 | wk | wv]
    # wlm_ref : (C, Vp)  f32 lm_head weight, vocab padded to 128 lanes
    # blm_ref : (1, Vp)  f32 lm_head bias (padded)
    # out_ref : (B*T, Vp) f32 logits (lane-dense 2-D store)
    BT, Vp = out_ref.shape
    Vr, C = tok_ref.shape
    T = pos_ref.shape[0]
    B = BT // T

    # ---- Vectorized embedding gather: one-hot + single MXU matmul ----------
    ids = idx_ref[...]                                            # (BT, 1) int32
    vocab_iota = jax.lax.broadcasted_iota(jnp.int32, (BT, Vr), 1)
    one_hot = (vocab_iota == ids).astype(jnp.float32)             # (BT, Vr)
    tok = jnp.dot(one_hot, tok_ref[...],
                  preferred_element_type=jnp.float32)             # (BT, C)

    # Positional embedding: one broadcast VPU add over the batch.
    x = tok.reshape(B, T, C) + pos_ref[...][None, :, :]           # (B, T, C)
    x2 = x.reshape(BT, C)

    # ---- Fused QKV projection (scale pre-folded into the q columns) --------
    qkv = jnp.dot(x2, wqkv_ref[...],
                  preferred_element_type=jnp.float32)             # (BT, 3C)
    q = qkv[:, 0 * C:1 * C].reshape(B, T, C)
    k = qkv[:, 1 * C:2 * C].reshape(B, T, C)
    v = qkv[:, 2 * C:3 * C].reshape(B, T, C)

    # ---- Batched causal attention (contract last dims: no transpose) -------
    wei = jnp.einsum("bqd,bkd->bqk", q, k,
                     preferred_element_type=jnp.float32)          # (B, T, T)
    row_id = jax.lax.broadcasted_iota(jnp.int32, (T, T), 0)
    col_id = jax.lax.broadcasted_iota(jnp.int32, (T, T), 1)
    wei = jnp.where((col_id <= row_id)[None, :, :], wei, jnp.float32(-1e30))

    # Numerically stable softmax, exact division (bit-close to f32 reference).
    wei_max = jnp.max(wei, axis=-1, keepdims=True)
    e = jnp.exp(wei - wei_max)
    wei = e / jnp.sum(e, axis=-1, keepdims=True)

    # ---- Attention output + lm_head (padded-V matmul, lane-dense store) ----
    attn = jnp.einsum("bqk,bkd->bqd", wei, v,
                      preferred_element_type=jnp.float32)         # (B, T, C)
    logits = jnp.dot(attn.reshape(BT, C), wlm_ref[...],
                     preferred_element_type=jnp.float32) + blm_ref[...]
    out_ref[...] = logits.astype(out_ref.dtype)


def prepare_params(params, block_size):
    """One-time weight packing / padding (hoisted out of the forward path)."""
    tok = params["tok_emb"]
    vocab, C = tok.shape
    V = params["wlm"].shape[1]
    Vr = _round_up(vocab, 128)       # one-hot lane dim / padded token-table rows
    Vp = _round_up(V, 128)           # padded lm_head vocab (lane-dense output)
    scale = float(C) ** -0.5

    return {
        "tok_pad": jnp.pad(tok, ((0, Vr - vocab), (0, 0))),            # (Vr, C)
        "pos_emb": params["pos_emb"],                                   # (bs, C)
        "wqkv": jnp.concatenate(
            [params["wq"] * scale, params["wk"], params["wv"]], axis=1),  # (C,3C)
        "wlm_pad": jnp.pad(params["wlm"], ((0, 0), (0, Vp - V))),       # (C, Vp)
        "blm_pad": jnp.pad(params["blm"], (0, Vp - V)).reshape(1, Vp),  # (1, Vp)
        "vocab_size": vocab,
        "V": V,
        "C": C,
        "block_size": block_size,
    }


def bingram_forward(idx, prep, targets=None):
    """Forward pass. idx: (B, T) int token ids. Returns (logits, loss)."""
    block_size = prep["block_size"]
    B, T_in = idx.shape
    T = min(T_in, block_size)
    idx = idx[:, -T:]

    C = prep["C"]
    V = prep["V"]
    Vr = prep["tok_pad"].shape[0]
    Vp = prep["wlm_pad"].shape[1]
    BT = B * T

    # Clip ids (bounds safety); one-hot gather is OOB-safe regardless.
    idx_flat = jnp.clip(idx.astype(jnp.int32), 0,
                        prep["vocab_size"] - 1).reshape(BT, 1)
    pos_slice = prep["pos_emb"][:T]                               # (T, C)

    grid_spec = pltpu.PrefetchScalarGridSpec(
        num_scalar_prefetch=0,
        grid=(1,),                      # single step: no per-step overhead
        in_specs=[
            pl.BlockSpec((BT, 1), lambda i: (0, 0)),              # idx
            pl.BlockSpec((Vr, C), lambda i: (0, 0)),              # tok table (padded)
            pl.BlockSpec((T, C), lambda i: (0, 0)),               # pos table
            pl.BlockSpec((C, 3 * C), lambda i: (0, 0)),           # packed qkv
            pl.BlockSpec((C, Vp), lambda i: (0, 0)),              # lm_head W (padded)
            pl.BlockSpec((1, Vp), lambda i: (0, 0)),              # lm_head b (padded)
        ],
        out_specs=pl.BlockSpec((BT, Vp), lambda i: (0, 0)),       # 2-D lane-dense
    )

    logits_p = pl.pallas_call(
        _fused_gpt_kernel,
        out_shape=jax.ShapeDtypeStruct((BT, Vp), jnp.float32),
        grid_spec=grid_spec,
        compiler_params=pltpu.CompilerParams(
            dimension_semantics=("arbitrary",)),
    )(idx_flat, prep["tok_pad"], pos_slice, prep["wqkv"],
      prep["wlm_pad"], prep["blm_pad"])

    logits = logits_p.reshape(B, T, Vp)[:, :, :V]

    # TODO(synk): cross-entropy loss branch (targets is not None) not implemented;
    # padded vocab columns must be excluded from the softmax denominator there.
    return logits, None


def init_params(key, block_size, vocab_size, n_embd):
    ks = jax.random.split(key, 7)
    s = 0.02
    return {
        "tok_emb": s * jax.random.normal(ks[0], (vocab_size, n_embd), jnp.float32),
        "pos_emb": s * jax.random.normal(ks[1], (block_size, n_embd), jnp.float32),
        "wq": s * jax.random.normal(ks[2], (n_embd, n_embd), jnp.float32),
        "wk": s * jax.random.normal(ks[3], (n_embd, n_embd), jnp.float32),
        "wv": s * jax.random.normal(ks[4], (n_embd, n_embd), jnp.float32),
        "wlm": s * jax.random.normal(ks[5], (n_embd, vocab_size), jnp.float32),
        "blm": s * jax.random.normal(ks[6], (vocab_size,), jnp.float32),
    }


def _reference_forward(idx, params, block_size):
    """Pure-JAX reference for correctness check (matches the PyTorch module)."""
    B, T_in = idx.shape
    T = min(T_in, block_size)
    idx = idx[:, -T:]
    x = params["tok_emb"][idx] + params["pos_emb"][jnp.arange(T)][None]
    C = x.shape[-1]
    q = x @ params["wq"]
    k = x @ params["wk"]
    v = x @ params["wv"]
    wei = jnp.einsum("btc,bsc->bts", q, k) * (C ** -0.5)
    mask = jnp.tril(jnp.ones((T, T), bool))
    wei = jnp.where(mask[None], wei, -jnp.inf)
    wei = jax.nn.softmax(wei, axis=-1)
    out = jnp.einsum("bts,bsc->btc", wei, v)
    return out @ params["wlm"] + params["blm"]


if __name__ == "__main__":
    block_size = 8
    vocab_size = 65
    n_embd = 32
    B, T = 2, 8

    key = jax.random.PRNGKey(0)
    k_idx, k_params = jax.random.split(key)
    idx = jax.random.randint(k_idx, (B, T), 0, vocab_size, dtype=jnp.int32)
    params = init_params(k_params, block_size, vocab_size, n_embd)

    prep = prepare_params(params, block_size)        # one-time packing/padding

    logits, loss = bingram_forward(idx, prep)
    logits = jax.block_until_ready(logits)

    ref = _reference_forward(idx, params, block_size)
    assert logits.shape == (B, T, vocab_size)
    assert loss is None
    err = float(jnp.max(jnp.abs(logits - ref)))
    assert jnp.allclose(logits, ref, atol=1e-5, rtol=1e-5), err

    print("KERNEL_OK")
</pallas_src>

<mosaic_0001>
module attributes {stable_mosaic.version = 11 : i64} {
  func.func @_fused_gpt_kernel(%arg0: i32, %arg1: memref<16x1xi32, #tpu.memory_space<vmem>>, %arg2: memref<128x32xf32, #tpu.memory_space<vmem>>, %arg3: memref<8x32xf32, #tpu.memory_space<vmem>>, %arg4: memref<32x96xf32, #tpu.memory_space<vmem>>, %arg5: memref<32x128xf32, #tpu.memory_space<vmem>>, %arg6: memref<1x128xf32, #tpu.memory_space<vmem>>, %arg7: memref<16x128xf32, #tpu.memory_space<vmem>>) attributes {dimension_semantics = [#tpu.dimension_semantics<arbitrary>], iteration_bounds = array<i64: 1>, scalar_prefetch = 0 : i64, scratch_operands = 0 : i64, tpu.core_type = #tpu.core_type<tc>, window_params = [{pipeline_mode = #tpu.pipeline_mode<synchronous>, transform_indices = @transform_0, window_bounds = array<i64: 16, 1>}, {pipeline_mode = #tpu.pipeline_mode<synchronous>, transform_indices = @transform_1, window_bounds = array<i64: 128, 32>}, {pipeline_mode = #tpu.pipeline_mode<synchronous>, transform_indices = @transform_2, window_bounds = array<i64: 8, 32>}, {pipeline_mode = #tpu.pipeline_mode<synchronous>, transform_indices = @transform_3, window_bounds = array<i64: 32, 96>}, {pipeline_mode = #tpu.pipeline_mode<synchronous>, transform_indices = @transform_4, window_bounds = array<i64: 32, 128>}, {pipeline_mode = #tpu.pipeline_mode<synchronous>, transform_indices = @transform_5, window_bounds = array<i64: 1, 128>}, {pipeline_mode = #tpu.pipeline_mode<synchronous>, transform_indices = @transform_6, window_bounds = array<i64: 16, 128>}]} {
    %c0 = arith.constant 0 : index
    %c0_0 = arith.constant 0 : index
    %0 = vector.load %arg1[%c0, %c0_0] : memref<16x1xi32, #tpu.memory_space<vmem>>, vector<16x1xi32>
    %1 = tpu.iota {dimensions = array<i32: 1>} : vector<16x128xi32>
    %2 = vector.broadcast %0 : vector<16x1xi32> to vector<16x128xi32>
    %3 = arith.cmpi eq, %1, %2 : vector<16x128xi32>
    %4 = arith.extui %3 : vector<16x128xi1> to vector<16x128xi32>
    %5 = arith.sitofp %4 : vector<16x128xi32> to vector<16x128xf32>
    %c0_1 = arith.constant 0 : index
    %c0_2 = arith.constant 0 : index
    %6 = vector.load %arg2[%c0_1, %c0_2] : memref<128x32xf32, #tpu.memory_space<vmem>>, vector<128x32xf32>
    %cst = arith.constant dense<0.000000e+00> : vector<16x32xf32>
    %7 = tpu.matmul %5, %6, %cst {dimension_numbers = #tpu.dot_dimension_numbers<[1], [0], [0], [1], [0, 0, 1, 1], [], []>} : vector<16x128xf32>, vector<128x32xf32>, vector<16x32xf32> -> vector<16x32xf32>
    %8 = vector.shape_cast %7 : vector<16x32xf32> to vector<2x8x32xf32>
    %c0_3 = arith.constant 0 : index
    %c0_4 = arith.constant 0 : index
    %9 = vector.load %arg3[%c0_3, %c0_4] : memref<8x32xf32, #tpu.memory_space<vmem>>, vector<8x32xf32>
    %10 = vector.shape_cast %9 : vector<8x32xf32> to vector<1x8x32xf32>
    %11 = vector.broadcast %10 : vector<1x8x32xf32> to vector<2x8x32xf32>
    %12 = arith.addf %8, %11 : vector<2x8x32xf32>
    %13 = vector.shape_cast %12 : vector<2x8x32xf32> to vector<16x32xf32>
    %c0_5 = arith.constant 0 : index
    %c0_6 = arith.constant 0 : index
    %14 = vector.load %arg4[%c0_5, %c0_6] : memref<32x96xf32, #tpu.memory_space<vmem>>, vector<32x96xf32>
    %cst_7 = arith.constant dense<0.000000e+00> : vector<16x96xf32>
    %15 = tpu.matmul %13, %14, %cst_7 {dimension_numbers = #tpu.dot_dimension_numbers<[1], [0], [0], [1], [0, 0, 1, 1], [], []>} : vector<16x32xf32>, vector<32x96xf32>, vector<16x96xf32> -> vector<16x96xf32>
    %16 = vector.extract_strided_slice %15 {offsets = [0, 0], sizes = [16, 32], strides = [1, 1]} : vector<16x96xf32> to vector<16x32xf32>
    %17 = vector.shape_cast %16 : vector<16x32xf32> to vector<2x8x32xf32>
    %18 = vector.extract_strided_slice %15 {offsets = [0, 32], sizes = [16, 32], strides = [1, 1]} : vector<16x96xf32> to vector<16x32xf32>
    %19 = vector.shape_cast %18 : vector<16x32xf32> to vector<2x8x32xf32>
    %20 = vector.extract_strided_slice %15 {offsets = [0, 64], sizes = [16, 32], strides = [1, 1]} : vector<16x96xf32> to vector<16x32xf32>
    %21 = vector.shape_cast %20 : vector<16x32xf32> to vector<2x8x32xf32>
    "tpu.trace_start"() <{level = 10 : i32, message = "bqd,bkd->bqk"}> : () -> ()
    %cst_8 = arith.constant dense<0.000000e+00> : vector<2x8x8xf32>
    %22 = tpu.matmul %17, %19, %cst_8 {dimension_numbers = #tpu.dot_dimension_numbers<[2], [2], [1], [1], [0, 0, 0, 1, 1, 1], [0], [0]>} : vector<2x8x32xf32>, vector<2x8x32xf32>, vector<2x8x8xf32> -> vector<2x8x8xf32>
    "tpu.trace_stop"() : () -> ()
    %23 = tpu.iota {dimensions = array<i32: 0>} : vector<8x8xi32>
    %24 = tpu.iota {dimensions = array<i32: 1>} : vector<8x8xi32>
    %25 = arith.cmpi sle, %24, %23 : vector<8x8xi32>
    %26 = vector.shape_cast %25 : vector<8x8xi1> to vector<1x8x8xi1>
    %cst_9 = arith.constant -1.000000e+30 : f32
    %27 = vector.shape_cast %26 : vector<1x8x8xi1> to vector<1x8x8xi1>
    %28 = vector.broadcast %27 : vector<1x8x8xi1> to vector<2x8x8xi1>
    %29 = vector.broadcast %cst_9 : f32 to vector<2x8x8xf32>
    %30 = arith.select %28, %22, %29 : vector<2x8x8xi1>, vector<2x8x8xf32>
    %cst_10 = arith.constant dense<0xFF800000> : vector<2x8xf32>
    %31 = vector.multi_reduction <maximumf>, %30, %cst_10 [2] : vector<2x8x8xf32> to vector<2x8xf32>
    %32 = vector.shape_cast %31 : vector<2x8xf32> to vector<2x8x1xf32>
    %33 = vector.broadcast %32 : vector<2x8x1xf32> to vector<2x8x8xf32>
    %34 = arith.subf %30, %33 : vector<2x8x8xf32>
    %35 = math.exp %34 : vector<2x8x8xf32>
    %cst_11 = arith.constant dense<0.000000e+00> : vector<2x8xf32>
    %36 = vector.multi_reduction <add>, %35, %cst_11 [2] : vector<2x8x8xf32> to vector<2x8xf32>
    %37 = vector.shape_cast %36 : vector<2x8xf32> to vector<2x8x1xf32>
    %38 = vector.broadcast %37 : vector<2x8x1xf32> to vector<2x8x8xf32>
    %39 = arith.divf %35, %38 : vector<2x8x8xf32>
    "tpu.trace_start"() <{level = 10 : i32, message = "bqk,bkd->bqd"}> : () -> ()
    %cst_12 = arith.constant dense<0.000000e+00> : vector<2x8x32xf32>
    %40 = tpu.matmul %39, %21, %cst_12 {dimension_numbers = #tpu.dot_dimension_numbers<[2], [1], [1], [2], [0, 0, 0, 1, 1, 2], [0], [0]>} : vector<2x8x8xf32>, vector<2x8x32xf32>, vector<2x8x32xf32> -> vector<2x8x32xf32>
    "tpu.trace_stop"() : () -> ()
    %41 = vector.shape_cast %40 : vector<2x8x32xf32> to vector<16x32xf32>
    %c0_13 = arith.constant 0 : index
    %c0_14 = arith.constant 0 : index
    %42 = vector.load %arg5[%c0_13, %c0_14] : memref<32x128xf32, #tpu.memory_space<vmem>>, vector<32x128xf32>
    %cst_15 = arith.constant dense<0.000000e+00> : vector<16x128xf32>
    %43 = tpu.matmul %41, %42, %cst_15 {dimension_numbers = #tpu.dot_dimension_numbers<[1], [0], [0], [1], [0, 0, 1, 1], [], []>} : vector<16x32xf32>, vector<32x128xf32>, vector<16x128xf32> -> vector<16x128xf32>
    %c0_16 = arith.constant 0 : index
    %c0_17 = arith.constant 0 : index
    %44 = vector.load %arg6[%c0_16, %c0_17] : memref<1x128xf32, #tpu.memory_space<vmem>>, vector<1x128xf32>
    %45 = vector.broadcast %44 : vector<1x128xf32> to vector<16x128xf32>
    %46 = arith.addf %43, %45 : vector<16x128xf32>
    %c0_18 = arith.constant 0 : index
    %c0_19 = arith.constant 0 : index
    %47 = vector.load %arg7[%c0_18, %c0_19] : memref<16x128xf32, #tpu.memory_space<vmem>>, vector<16x128xf32>
    tpu.vector_store %arg7[%c0_18, %c0_19], %46 {strides = array<i32>} : memref<16x128xf32, #tpu.memory_space<vmem>>, vector<16x128xf32>,
    return
  }
  func.func @transform_0(%arg0: i32) -> (i32, i32) {
    %c0_i32 = arith.constant 0 : i32
    %c0_i32_0 = arith.constant 0 : i32
    %c0_i32_1 = arith.constant 0 : i32
    return %c0_i32, %c0_i32_0 : i32, i32
  }
  func.func @transform_1(%arg0: i32) -> (i32, i32) {
    %c0_i32 = arith.constant 0 : i32
    %c0_i32_0 = arith.constant 0 : i32
    %c0_i32_1 = arith.constant 0 : i32
    return %c0_i32, %c0_i32_0 : i32, i32
  }
  func.func @transform_2(%arg0: i32) -> (i32, i32) {
    %c0_i32 = arith.constant 0 : i32
    %c0_i32_0 = arith.constant 0 : i32
    %c0_i32_1 = arith.constant 0 : i32
    return %c0_i32, %c0_i32_0 : i32, i32
  }
  func.func @transform_3(%arg0: i32) -> (i32, i32) {
    %c0_i32 = arith.constant 0 : i32
    %c0_i32_0 = arith.constant 0 : i32
    %c0_i32_1 = arith.constant 0 : i32
    return %c0_i32, %c0_i32_0 : i32, i32
  }
  func.func @transform_4(%arg0: i32) -> (i32, i32) {
    %c0_i32 = arith.constant 0 : i32
    %c0_i32_0 = arith.constant 0 : i32
    %c0_i32_1 = arith.constant 0 : i32
    return %c0_i32, %c0_i32_0 : i32, i32
  }
  func.func @transform_5(%arg0: i32) -> (i32, i32) {
    %c0_i32 = arith.constant 0 : i32
    %c0_i32_0 = arith.constant 0 : i32
    %c0_i32_1 = arith.constant 0 : i32
    return %c0_i32, %c0_i32_0 : i32, i32
  }
  func.func @transform_6(%arg0: i32) -> (i32, i32) {
    %c0_i32 = arith.constant 0 : i32
    %c0_i32_0 = arith.constant 0 : i32
    %c0_i32_1 = arith.constant 0 : i32
    return %c0_i32, %c0_i32_0 : i32, i32
  }
}

</mosaic_0001>

<bundles_post_ra>
// kernel: tpu_custom_call.1
= control target key start
LH: loop header
LB: loop body
LE: loop exit
PB: predicated region body
PF: predicated region fallthrough
CT: control target
= control target key end

     0   :  { %v886_v2 = vmov 0   ;;  %s1052_s0 = inlined_call_operand.vmem [shape: s32[16,1], index: 0, kind: input, shape index: {}]   ;;  %s1053_s1 = inlined_call_operand.vmem [shape: f32[128,32], index: 1, kind: input, shape index: {}]   ;;  %s1054_s2 = inlined_call_operand.vmem [shape: f32[8,32], index: 2, kind: input, shape index: {}]   ;;  %s1055_s3 = inlined_call_operand.vmem [shape: f32[32,96], index: 3, kind: input, shape index: {}]   ;;  %s1056_s4 = inlined_call_operand.vmem [shape: f32[32,128], index: 4, kind: input, shape index: {}]   ;;  %s1057_s5 = inlined_call_operand.vmem [shape: f32[1,128], index: 5, kind: input, shape index: {}]   ;;  %s1058_s6 = inlined_call_operand.hbm [shape: f32[16,128], index: 6, kind: output, shape index: {}]  }
   0x1   :  { %v24_v0 = vld [vmem:[%s1052_s0] sm:$0xff]  ;;  %853 = vset.pattern.permute.xlu0 %v886_v2  ;;  %v41_v3 = vld [vmem:[%s1053_s1 + $0x8] sm:$0xff]  ;;  %v42_v4 = vld [vmem:[%s1053_s1 + $0x10] sm:$0xff] }
   0x2   :  { %v40_v1 = vld [vmem:[%s1053_s1] sm:$0xff]  ;;  %v43_v5 = vld [vmem:[%s1053_s1 + $0x18] sm:$0xff]  ;;  %29 = vperm.xlu0 %853, %v24_v0   ;;  %v25_v8 = vld [vmem:[%s1052_s0 + $0x8] sm:$0xff] }
   0x3   :  { %v796_v6 = vpack.c.bf16 %v41_v3, %v40_v1  ;;  %v800_v7 = vpack.c.bf16 %v43_v5, %v42_v4  ;;  %v44_v9 = vld [vmem:[%s1053_s1 + $0x20] sm:$0xff]  ;;  %v45_v10 = vld [vmem:[%s1053_s1 + $0x28] sm:$0xff]  ;;  %v46_v12 = vld [vmem:[%s1053_s1 + $0x30] sm:$0xff] }
   0x4   :  { %v804_v11 = vpack.c.bf16 %v45_v10, %v44_v9 }
   0x5   :  { %797 = vmatprep.subr.bf16.mxu0 %v796_v6 }
   0x6   :  { %799 = vmatpush3.bf16.msra.mxu0 %v796_v6  ;;  %32 = vperm.xlu0 %853, %v25_v8  }
   0x7   :  { %801 = vmatprep.subr.bf16.mxu0 %v800_v7 }
   0x8   :  { %11 = vsyncpa [#allocation3], 0  ;;  %v47_v13 = vld [vmem:[%s1053_s1 + $0x38] sm:$0xff]  ;;  %v134_v14 = vld [vmem:[%s1055_s3] sm:$0xff]  ;;  %v26_v30 = vlaneseq  ;;  %v887_v33 = vmov 1.0   ;;  %vm138_vm2 = vcmask 261120  }
   0x9   :  { %v135_v15 = vld [vmem:[%s1055_s3 + $0x8] sm:$0xff]  ;;  %v808_v17 = vpack.c.bf16 %v47_v13, %v46_v12  ;;  %v48_v18 = vld [vmem:[%s1053_s1 + $0x40] sm:$0xff]  ;;  %v50_v21 = vld [vmem:[%s1053_s1 + $0x50] sm:$0xff]  ;;  %v888_v43 = vmov 0.0   ;;  %vm889_vm3 = vmmov 0   ;;  %vm381_vm5 = vcmask 64512  }
   0xa   :  { %v828_v16 = vpack.c.bf16 %v135_v15, %v134_v14  ;;  %803 = vmatpush3.bf16.msra.mxu0 %v800_v7  ;;  %v49_v19 = vld [vmem:[%s1053_s1 + $0x48] sm:$0xff]  ;;  %v51_v22 = vld [vmem:[%s1053_s1 + $0x58] sm:$0xff]  ;;  %v52_v24 = vld [vmem:[%s1053_s1 + $0x60] sm:$0xff]  ;;  %v27_v31 = vand.u32 127, %v26_v30  ;;  %v375_v48 = vshrl.u32 %v26_v30, 7  ;;  %s892_s26 = smov [#allocation2]  }
   0xb   :  { %805 = vmatprep.subr.bf16.mxu0 %v804_v11  ;;  %v812_v20 = vpack.c.bf16 %v49_v19, %v48_v18  ;;  %v816_v23 = vpack.c.bf16 %v51_v22, %v50_v21  ;;  %v53_v25 = vld [vmem:[%s1053_s1 + $0x68] sm:$0xff]  ;;  %v54_v27 = vld [vmem:[%s1053_s1 + $0x70] sm:$0xff]  ;;  %v55_v28 = vld [vmem:[%s1053_s1 + $0x78] sm:$0xff]  ;;  %s655_s27 = sshll.u32 %s892_s26, 4  ;;  %s656_s27 = int_to_ptr.vmem [resolvable:$true] %s655_s27 }
   0xc   :  { %829 = vmatprep.subr.bf16.mxu1 %v828_v16  ;;  %v820_v26 = vpack.c.bf16 %v53_v25, %v52_v24  ;;  %v824_v29 = vpack.c.bf16 %v55_v28, %v54_v27  ;;  %v136_v35 = vld [vmem:[%s1055_s3 + $0x10] sm:$0xff]  ;;  %v137_v36 = vld [vmem:[%s1055_s3 + $0x18] sm:$0xff]  ;;  %v131_v38 = vld [vmem:[%s1054_s2] sm:$0xff]  ;;  %s890_s3 = smov 96   ;;  %vm376_vm4 = vcmp.le.s32.totalorder %v27_v31, %v375_v48  ;;  %s891_s2 = smov 64  }
   0xd   :  { %831 = vmatpush3.bf16.msra.mxu1 %v828_v16  ;;  %v832_v37 = vpack.c.bf16 %v137_v36, %v136_v35  ;;  %v556_v6 = vld [vmem:[%s1056_s4] sm:$0xff]  ;;  %v557_v7 = vld [vmem:[%s1056_s4 + $0x8] sm:$0xff]  ;;  %v558_v14 = vld [vmem:[%s1056_s4 + $0x10] sm:$0xff]  ;;  %p867_p1 = scmp.lt.s32.totalorder %s656_s27, %s656_s27 }
   0xe   :  { %807 = vmatpush3.bf16.msra.mxu0 %v804_v11  ;;  %v836_v10 = vpack.c.bf16 %v557_v7, %v556_v6  ;;  %v559_v15 = vld [vmem:[%s1056_s4 + $0x18] sm:$0xff]  ;;  %v678_v21 = vld [vmem:[%s1057_s5] ss:$0 sm:$0xff]  ;;  %s862_s4 = scalar_lea.vmem %s656_s27, 256 }
   0xf   :  { %809 = vmatprep.subr.bf16.mxu0 %v808_v17  ;;  %833 = vmatprep.subr.bf16.mxu1 %v832_v37  ;;  %v840_v16 = vpack.c.bf16 %v559_v15, %v558_v14  ;;  %p863_p0 = scmp.ne.s32.totalorder %s656_s27, %s862_s4  ;;  %p868_p2 = scmp.lt.s32.totalorder %s862_s4, %s862_s4 }
  0x11   :  { %835 = vmatpush3.bf16.msra.mxu1 %v832_v37  ;;  %p869_p3 = por %p868_p2, %p867_p1 }
  0x12   :  { %811 = vmatpush3.bf16.msra.mxu0 %v808_v17  ;;  %765 = vmatprep.subr.mxu1 %v888_v43 }
  0x13   :  { %813 = vmatprep.subr.bf16.mxu0 %v812_v20  ;;  %p870_p4 = pnand %p869_p3, %p863_p0 }
  0x16   :  { %815 = vmatpush3.bf16.msra.mxu0 %v812_v20 }
  0x17   :  { %817 = vmatprep.subr.bf16.mxu0 %v816_v23 }
  0x1a   :  { %819 = vmatpush3.bf16.msra.mxu0 %v816_v23 }
  0x1b   :  { %821 = vmatprep.subr.bf16.mxu0 %v820_v26 }
  0x1e   :  { %823 = vmatpush3.bf16.msra.mxu0 %v820_v26 }
  0x1f   :  { %825 = vmatprep.subr.bf16.mxu0 %v824_v29 }
  0x22   :  { %827 = vmatpush3.bf16.msra.mxu0 %v824_v29 }
  0x81   :  { %v30_v32 = vpop.permute.xlu0 %29 }
  0x82   :  { %vm34_vm0 = vcmp.eq.s32.totalorder %v27_v31, %v30_v32 }
  0x83   :  { %751 = vmatprep.mubr.msk.f32.mxu0 %vm34_vm0, %v887_v33 }
  0x85   :  { %v33_v34 = vpop.permute.xlu0 %32 }
  0x86   :  { %vm35_vm1 = vcmp.eq.s32.totalorder %v27_v31, %v33_v34 }
  0x87   :  { %752 = vmatmul.mubr.msk.f32.vlgmr.msra.gmra.mrb[0].mxu0 %vm35_vm1, %v887_v33 }
 0x15a   :  { %v753_v39 = vpop.f32.mrb[0].mxu0 }
 0x15b   :  { %v122_v40 = vpop.f32.mrb[1].mxu0  ;;  %v133_v42 = vadd.f32 %v753_v39, %v131_v38 }
 0x15c   :  { %v132_v41 = vadd.f32 %v131_v38, %v122_v40 }
 0x15e   :  { %762 = vmatprep.mubr.msk.f32.mxu1 %vm138_vm2, %v132_v41 }
 0x15f   :  { %763 = vmatmul.mubr.msk.f32.vlgmr.msra.gmra.mrb[0].mxu1 %vm138_vm2, %v133_v42 }
 0x160   :  { %767 = vmatprep.mubr.msk.f32.mxu1 %vm889_vm3, %v888_v43 }
 0x232   :  { %v764_v44 = vpop.f32.mrb[0].mxu1 }
 0x233   :  { %v211_v45 = vpop.f32.mrb[1].mxu1 }
 0x234   :  { %221 = vrot.lane.b32.xlu1 %v211_v45, %s890_s3 }
 0x238   :  { %298 = vrot.lane.b32.xlu1 %v764_v44, %s890_s3 }
 0x2a6   :  { %v222_v46 = vpop.permute.xlu1 %221 }
 0x2a7   :  { %766 = vmatpush3.xpose.msk.msra.mxu1 %vm138_vm2, %v222_v46 }
 0x2a8   :  { %770 = vmatprep.subr.mxu1 %v888_v43 }
 0x2aa   :  { %768 = vmatmul.mubr.msk.f32.vlgmr.msra.gmra.mrb[2].mxu1 %vm138_vm2, %v211_v45  ;;  %v299_v47 = vpop.permute.xlu1 %298 }
 0x2ab   :  { %771 = vmatpush3.xpose.msk.msra.mxu1 %vm138_vm2, %v299_v47  ;;  %772 = vmatprep.mubr.msk.f32.mxu1 %vm889_vm3, %v888_v43 }
 0x2ac   :  { %775 = vmatprep.subr.mxu1 %v888_v43 }
 0x2ae   :  { %773 = vmatmul.mubr.msk.f32.vlgmr.msra.gmra.mrb[4].mxu1 %vm138_vm2, %v764_v44 }
 0x2af   :  { %777 = vmatprep.mubr.msk.f32.mxu1 %vm889_vm3, %v888_v43 }
 0x37d   :  { %v293_v49 = vpop.f32.mrb[2].mxu1 }
 0x37e   :  { %v379_v50 = vsel %vm376_vm4, %v293_v49, -1e+30  ;;  %v769_v51 = vpop.f32.mrb[3].mxu1 }
 0x37f   :  { %v382_v52 = vsel %vm381_vm5, %v379_v50, -inf }
 0x380   :  { %383 = vmax.xlane.f32.xlu0 %v382_v52 }
 0x381   :  { %v370_v53 = vpop.f32.mrb[4].mxu1 }
 0x382   :  { %v380_v54 = vsel %vm376_vm4, %v370_v53, -1e+30  ;;  %v774_v55 = vpop.f32.mrb[5].mxu1 }
 0x383   :  { %v385_v56 = vsel %vm381_vm5, %v380_v54, -inf }
 0x384   :  { %386 = vmax.xlane.f32.xlu1 %v385_v56 }
 0x395   :  { %404 = vrot.lane.b32.xlu1 %v211_v45, %s891_s2 }
 0x40d   :  { %v384_v57 = vpop.xlane.xlu0 %383 }
 0x40e   :  { %v388_v58 = vsub.f32 %v379_v50, %v384_v57 }
 0x410   :  { %v390_v59 = vmul.f32 1.442695, %v388_v58 }
 0x411   :  { %v387_v60 = vpop.xlane.xlu1 %386 }
 0x412   :  { %854 = vpow2.f32 %v390_v59  ;;  %v389_v61 = vsub.f32 %v380_v54, %v387_v60 }
 0x414   :  { %v392_v62 = vmul.f32 1.442695, %v389_v61 }
 0x415   :  { %v405_v63 = vpop.permute.xlu1 %404 }
 0x416   :  { %856 = vpow2.f32 %v392_v62  ;;  %776 = vmatpush3.msra.mxu1 %v405_v63 }
 0x417   :  { %780 = vmatprep.subr.mxu1 %v888_v43 }
 0x41c   :  { %v855_v0 = vpop.eup %854 }
 0x41d   :  { %v394_v1 = vsel %vm381_vm5, %v855_v0, 0.0 }
 0x41e   :  { %395 = vadd.xlane.f32.xlu0 %v394_v1 }
 0x420   :  { %v857_v2 = vpop.eup %856 }
 0x421   :  { %v397_v3 = vsel %vm381_vm5, %v857_v2, 0.0 }
 0x422   :  { %398 = vadd.xlane.f32.xlu0 %v397_v3 }
 0x438   :  { %480 = vrot.lane.b32.xlu0 %v764_v44, %s891_s2 }
 0x4ab   :  { %v396_v4 = vpop.xlane.xlu0 %395 }
 0x4ac   :  { %858 = vrcp.f32 %v396_v4 }
 0x4af   :  { %v399_v5 = vpop.xlane.xlu0 %398 }
 0x4b0   :  { %860 = vrcp.f32 %v399_v5 }
 0x4b3   :  { %v481_v11 = vpop.permute.xlu0 %480 }
 0x4b6   :  { %v859_v8 = vpop.eup %858 }
 0x4b7   :  { %v401_v9 = vmul.f32 %v859_v8, %v855_v0 }
 0x4b9   :  { %778 = vmatmul.mubr.msk.f32.vlgmr.msra.gmra.mrb[6].mxu1 %vm381_vm5, %v401_v9 }
 0x4ba   :  { %v861_v12 = vpop.eup %860  ;;  %781 = vmatpush3.msra.mxu1 %v481_v11  ;;  %782 = vmatprep.mubr.msk.f32.mxu1 %vm889_vm3, %v888_v43 }
 0x4bb   :  { %v403_v13 = vmul.f32 %v861_v12, %v857_v2  ;;  %837 = vmatprep.subr.bf16.mxu1 %v836_v10 }
 0x4bd   :  { %783 = vmatmul.mubr.msk.f32.vlgmr.msra.gmra.mrb[8].mxu1 %vm381_vm5, %v403_v13 }
 0x4be   :  { %839 = vmatpush3.bf16.msra.mxu1 %v836_v10 }
 0x4bf   :  { %841 = vmatprep.subr.bf16.mxu1 %v840_v16 }
 0x4c2   :  { %843 = vmatpush3.bf16.msra.mxu1 %v840_v16 }
 0x58c   :  { %v476_v17 = vpop.f32.mrb[6].mxu1 }
 0x58d   :  { %v779_v18 = vpop.f32.mrb[7].mxu1  ;;  %793 = vmatprep.mubr.msk.f32.mxu1 %vm138_vm2, %v476_v17 }
 0x590   :  { %v552_v19 = vpop.f32.mrb[8].mxu1 }
 0x591   :  { %v784_v20 = vpop.f32.mrb[9].mxu1  ;;  %794 = vmatmul.mubr.msk.f32.vlgmr.msra.gmra.mrb[10].mxu1 %vm138_vm2, %v552_v19 }
 0x664   :  { %v795_v22 = vpop.f32.mrb[10].mxu1 }
 0x665   :  { %v645_v23 = vadd.f32 %v795_v22, %v678_v21  ;;  %v639_v24 = vpop.f32.mrb[11].mxu1 }
 0x666   :  { %v640_v25 = vadd.f32 %v678_v21, %v639_v24 }
 0x667   :  { %649 = vst [vmem:[#allocation2 + $0x8] sm:$0xff] %v645_v23 }
 0x668   :  { %648 = vst [vmem:[#allocation2] sm:$0xff] %v640_v25 }
 0x669   :  { %873 = shalt.err (!%p870_p4)
}
 0x66a   :  { %s874_s5 = scalar_lea.hbm %s1058_s6, 256 }
 0x66b   :  { %p875_p5 = scmp.ne.s32.totalorder %s1058_s6, %s874_s5  ;;  %p878_p6 = scmp.lt.u32.totalorder %s874_s5, %s1058_s6 }
 0x66d   :  { %p880_p7 = pnand %p878_p6, %p875_p5 }
 0x66f   :  { %883 = shalt.err (!%p880_p7)
}
 0x670   :  { %s893_s10 = smov 128   ;;  %s894_s11 = smov 8  }
 0x671   :  { %661 = dma.vmem_to_hbm [thread:$0]  %s656_s27, 256, %s1058_s6, [#allocation3], %s893_s10, %s893_s10, %s894_s11  }
 0x672   :  { %884 = dma.done.wait [#allocation3], 256  }
 0x673   :  { %885 = vsyncadd [#allocation3], 4294967040 }
 0x674   :  { %665 = vsyncpa [#allocation3], 1 }

</bundles_post_ra>
